<compile_context>
chip_gen: v5e
topology: v5e:2x2
jax: 0.10.0
libtpu: 0.0.40
codegen_flags: <defaults>
</compile_context>

<pallas_src>
import jax
import jax.numpy as jnp
from jax.experimental import pallas as pl
from jax.experimental.pallas import tpu as pltpu

LANE = 128                 # TPU lane width
MAX_TILE = 1024            # max batch columns per grid step
TARGET_STEPS = 8           # aim for ~8 grid steps (pipelining + megacore)
CHUNK = 256                # inner column chunk; h1/h2 (64 x chunk) stay in vregs
DOT_DTYPE = jnp.bfloat16   # MXU operand dtype (use jnp.float32 for exact f32)


def _cdiv(a, b):
    return (a + b - 1) // b


def _round_up(n, m):
    return ((n + m - 1) // m) * m


def mapnet_kernel(x_ref, w1_ref, b1_ref, w2_ref, b2_ref, w3_ref, b3_ref, o_ref):
    # x_ref: (4, tile) f32; w*: [out, in] DOT_DTYPE; b*: [out, 1] f32;
    # o_ref: (2, tile) f32.  tile is a multiple of 128 (trace-time constant).
    tile = x_ref.shape[-1]
    chunk = CHUNK if tile % CHUNK == 0 else LANE
    nchunks = tile // chunk

    # Weights / biases are tiny -> hoist VMEM->vreg loads out of the loop.
    w1 = w1_ref[...]
    w2 = w2_ref[...]
    w3 = w3_ref[...]
    b1 = b1_ref[...]
    b2 = b2_ref[...]
    b3 = b3_ref[...]

    # Fully unrolled chunk loop (nchunks <= 8 is a trace-time constant); static
    # chunk-aligned slices -> unmasked lane-dense loads/stores, and per-chunk
    # h1/h2 (16/8 vregs) never spill to VMEM.
    for c in range(nchunks):
        off = c * chunk
        xb = x_ref[:, off:off + chunk].astype(w1.dtype)
        h1 = jnp.dot(w1, xb, preferred_element_type=jnp.float32) + b1
        h1 = jnp.maximum(h1, 0.0).astype(w2.dtype)
        h2 = jnp.dot(w2, h1, preferred_element_type=jnp.float32) + b2
        h2 = jnp.maximum(h2, 0.0).astype(w3.dtype)
        y = jnp.dot(w3, h2, preferred_element_type=jnp.float32) + b3
        o_ref[:, off:off + chunk] = y.astype(o_ref.dtype)


def _choose_tile(Bp):
    """Batch columns per grid step: multiple of 128, >=2 steps when possible."""
    if Bp <= LANE:
        return LANE
    t = _round_up(_cdiv(Bp, TARGET_STEPS), LANE)
    return int(min(MAX_TILE, max(LANE, t)))


def _mapnet_forward_t(xt, params):
    """Feature-major forward: xt [4, B] f32 -> [2, B] f32 (no layout copies)."""
    Din, B = xt.shape
    w1, b1 = params["w1"], params["b1"]   # (64, 4),  (64, 1)
    w2, b2 = params["w2"], params["b2"]   # (64, 64), (64, 1)
    w3, b3 = params["w3"], params["b3"]   # (2, 64),  (2, 1)
    Dh, Dout = w1.shape[0], w3.shape[0]

    # MXU operands in DOT_DTYPE (bf16 by default); biases stay f32.
    w1c = w1.astype(DOT_DTYPE)
    w2c = w2.astype(DOT_DTYPE)
    w3c = w3.astype(DOT_DTYPE)

    Bp = _round_up(B, LANE)            # pad only to the lane width
    if Bp != B:
        xt = jnp.pad(xt, ((0, 0), (0, Bp - B)))
    tile = _choose_tile(Bp)
    grid = (_cdiv(Bp, tile),)          # ragged last block is masked by Pallas

    in_specs = [
        pl.BlockSpec((Din, tile), lambda i: (0, i)),   # x tile (lane-dense)
        pl.BlockSpec((Dh, Din), lambda i: (0, 0)),     # w1 (VMEM-resident)
        pl.BlockSpec((Dh, 1), lambda i: (0, 0)),       # b1
        pl.BlockSpec((Dh, Dh), lambda i: (0, 0)),      # w2
        pl.BlockSpec((Dh, 1), lambda i: (0, 0)),       # b2
        pl.BlockSpec((Dout, Dh), lambda i: (0, 0)),    # w3
        pl.BlockSpec((Dout, 1), lambda i: (0, 0)),     # b3
    ]
    out_spec = pl.BlockSpec((Dout, tile), lambda i: (0, i))  # lane-dense output

    wbytes = jnp.dtype(DOT_DTYPE).itemsize
    flops = 2 * Bp * (Din * Dh + Dh * Dh + Dh * Dout)
    bytes_accessed = (
        4 * (Din * Bp + Dout * Bp)                        # x in, y out (f32)
        + wbytes * (Dh * Din + Dh * Dh + Dout * Dh)       # weights
        + 4 * (Dh + Dh + Dout)                            # biases
    )

    out_t = pl.pallas_call(
        mapnet_kernel,
        out_shape=jax.ShapeDtypeStruct((Dout, Bp), jnp.float32),
        grid_spec=pl.GridSpec(grid=grid, in_specs=in_specs, out_specs=out_spec),
        compiler_params=pltpu.CompilerParams(
            dimension_semantics=("parallel",),   # megacore batch sharding (v7x)
        ),
        cost_estimate=pl.CostEstimate(
            flops=flops, transcendentals=0, bytes_accessed=bytes_accessed),
    )(xt, w1c, b1, w2c, b2, w3c, b3)

    return out_t[:, :B]


# Jitted entry points.  mapnet_forward keeps the PyTorch MapNet.forward
# contract ([B, 4] -> [B, 2]); under jit the pad+transpose of x and the output
# transpose each collapse to a single XLA copy.  mapnet_forward_t is the
# zero-copy feature-major variant for producers/consumers that can use
# [4, B] / [2, B] directly.
mapnet_forward_t = jax.jit(_mapnet_forward_t)


@jax.jit
def mapnet_forward(x, params):
    return _mapnet_forward_t(x.T, params).T


def init_params(key):
    """Deterministic init mirroring MapNet.__init__:
    fc1/fc2: PyTorch-default-style uniform(-1/sqrt(fan_in), 1/sqrt(fan_in));
    fc3: weight ~ N(0, 0.001), bias = 0.  Weights kept in [out, in] layout."""
    din, dh, dout = 4, 64, 2
    k1, k2, k3, k4, k5 = jax.random.split(key, 5)
    lim1 = 1.0 / float(din) ** 0.5
    lim2 = 1.0 / float(dh) ** 0.5
    w1 = jax.random.uniform(k1, (dh, din), jnp.float32, -lim1, lim1)
    b1 = jax.random.uniform(k2, (dh, 1), jnp.float32, -lim1, lim1)
    w2 = jax.random.uniform(k3, (dh, dh), jnp.float32, -lim2, lim2)
    b2 = jax.random.uniform(k4, (dh, 1), jnp.float32, -lim2, lim2)
    w3 = 0.001 * jax.random.normal(k5, (dout, dh), jnp.float32)
    b3 = jnp.zeros((dout, 1), jnp.float32)
    return {"w1": w1, "b1": b1, "w2": w2, "b2": b2, "w3": w3, "b3": b3}


def reference_forward(x, p):
    """Pure f32 reference (PyTorch MapNet.forward semantics)."""
    h1 = jnp.maximum(x @ p["w1"].T + p["b1"].T, 0.0)
    h2 = jnp.maximum(h1 @ p["w2"].T + p["b2"].T, 0.0)
    return h2 @ p["w3"].T + p["b3"].T


def reference_forward_matched(x, p):
    """Mirrors the kernel's numerics (DOT_DTYPE MXU operands, f32 accumulate)."""
    dt = DOT_DTYPE
    h1 = jnp.dot(x.astype(dt), p["w1"].T.astype(dt),
                 preferred_element_type=jnp.float32) + p["b1"].T
    h1 = jnp.maximum(h1, 0.0)
    h2 = jnp.dot(h1.astype(dt), p["w2"].T.astype(dt),
                 preferred_element_type=jnp.float32) + p["b2"].T
    h2 = jnp.maximum(h2, 0.0)
    return jnp.dot(h2.astype(dt), p["w3"].T.astype(dt),
                   preferred_element_type=jnp.float32) + p["b3"].T


if __name__ == "__main__":
    key = jax.random.PRNGKey(0)
    kx, kp = jax.random.split(key)
    params = init_params(kp)

    # Batches deliberately not multiples of 128: exercises the 128-granular
    # padding and the multi-step ("parallel") grid (B=200 -> 2 steps of 128,
    # B=1000 -> 8 steps of 128).
    for B in (200, 1000):
        x = jax.random.normal(jax.random.fold_in(kx, B), (B, 4), jnp.float32)
        out = jax.block_until_ready(mapnet_forward(x, params))
        assert out.shape == (B, 2), out.shape
        ref_match = reference_forward_matched(x, params)
        ref_f32 = reference_forward(x, params)
        assert jnp.allclose(out, ref_match, atol=1e-4, rtol=1e-4), \
            "mismatch vs dtype-matched reference"
        assert jnp.allclose(out, ref_f32, atol=1e-3, rtol=5e-2), \
            "mismatch vs f32 reference"

    # Feature-major path: [4, B] in -> [2, B] out (no wrapper transposes).
    B = 200
    x = jax.random.normal(kx, (B, 4), jnp.float32)
    out_t = jax.block_until_ready(mapnet_forward_t(x.T, params))
    assert out_t.shape == (2, B), out_t.shape
    assert jnp.allclose(out_t.T, reference_forward_matched(x, params),
                        atol=1e-4, rtol=1e-4), "feature-major path mismatch"

    print("KERNEL_OK")
</pallas_src>

<mosaic_0001>
module attributes {stable_mosaic.version = 11 : i64} {
  func.func @mapnet_kernel(%arg0: i32, %arg1: memref<4x128xf32, #tpu.memory_space<vmem>>, %arg2: memref<64x4xbf16, #tpu.memory_space<vmem>>, %arg3: memref<64x1xf32, #tpu.memory_space<vmem>>, %arg4: memref<64x64xbf16, #tpu.memory_space<vmem>>, %arg5: memref<64x1xf32, #tpu.memory_space<vmem>>, %arg6: memref<2x64xbf16, #tpu.memory_space<vmem>>, %arg7: memref<2x1xf32, #tpu.memory_space<vmem>>, %arg8: memref<2x128xf32, #tpu.memory_space<vmem>>) attributes {dimension_semantics = [#tpu.dimension_semantics<parallel>], iteration_bounds = array<i64: 2>, scalar_prefetch = 0 : i64, scratch_operands = 0 : i64, tpu.core_type = #tpu.core_type<tc>, window_params = [{transform_indices = @transform_0, window_bounds = array<i64: 4, 128>}, {pipeline_mode = #tpu.pipeline_mode<synchronous>, transform_indices = @transform_1, window_bounds = array<i64: 64, 4>}, {pipeline_mode = #tpu.pipeline_mode<synchronous>, transform_indices = @transform_2, window_bounds = array<i64: 64, 1>}, {pipeline_mode = #tpu.pipeline_mode<synchronous>, transform_indices = @transform_3, window_bounds = array<i64: 64, 64>}, {pipeline_mode = #tpu.pipeline_mode<synchronous>, transform_indices = @transform_4, window_bounds = array<i64: 64, 1>}, {pipeline_mode = #tpu.pipeline_mode<synchronous>, transform_indices = @transform_5, window_bounds = array<i64: 2, 64>}, {pipeline_mode = #tpu.pipeline_mode<synchronous>, transform_indices = @transform_6, window_bounds = array<i64: 2, 1>}, {transform_indices = @transform_7, window_bounds = array<i64: 2, 128>}]} {
    %c0 = arith.constant 0 : index
    %c0_0 = arith.constant 0 : index
    %0 = vector.load %arg2[%c0, %c0_0] : memref<64x4xbf16, #tpu.memory_space<vmem>>, vector<64x4xbf16>
    %c0_1 = arith.constant 0 : index
    %c0_2 = arith.constant 0 : index
    %1 = vector.load %arg4[%c0_1, %c0_2] : memref<64x64xbf16, #tpu.memory_space<vmem>>, vector<64x64xbf16>
    %c0_3 = arith.constant 0 : index
    %c0_4 = arith.constant 0 : index
    %2 = vector.load %arg6[%c0_3, %c0_4] : memref<2x64xbf16, #tpu.memory_space<vmem>>, vector<2x64xbf16>
    %c0_5 = arith.constant 0 : index
    %c0_6 = arith.constant 0 : index
    %3 = vector.load %arg3[%c0_5, %c0_6] : memref<64x1xf32, #tpu.memory_space<vmem>>, vector<64x1xf32>
    %c0_7 = arith.constant 0 : index
    %c0_8 = arith.constant 0 : index
    %4 = vector.load %arg5[%c0_7, %c0_8] : memref<64x1xf32, #tpu.memory_space<vmem>>, vector<64x1xf32>
    %c0_9 = arith.constant 0 : index
    %c0_10 = arith.constant 0 : index
    %5 = vector.load %arg7[%c0_9, %c0_10] : memref<2x1xf32, #tpu.memory_space<vmem>>, vector<2x1xf32>
    %c0_11 = arith.constant 0 : index
    %c0_12 = arith.constant 0 : index
    %6 = vector.load %arg1[%c0_11, %c0_12] : memref<4x128xf32, #tpu.memory_space<vmem>>, vector<4x128xf32>
    %7 = arith.truncf %6 : vector<4x128xf32> to vector<4x128xbf16>
    %cst = arith.constant dense<0.000000e+00> : vector<64x128xf32>
    %8 = tpu.matmul %0, %7, %cst {dimension_numbers = #tpu.dot_dimension_numbers<[1], [0], [0], [1], [0, 0, 1, 1], [], []>} : vector<64x4xbf16>, vector<4x128xbf16>, vector<64x128xf32> -> vector<64x128xf32>
    %9 = vector.broadcast %3 : vector<64x1xf32> to vector<64x128xf32>
    %10 = arith.addf %8, %9 : vector<64x128xf32>
    %cst_13 = arith.constant 0.000000e+00 : f32
    %11 = vector.broadcast %cst_13 : f32 to vector<64x128xf32>
    %12 = arith.maximumf %10, %11 : vector<64x128xf32>
    %13 = arith.truncf %12 : vector<64x128xf32> to vector<64x128xbf16>
    %cst_14 = arith.constant dense<0.000000e+00> : vector<64x128xf32>
    %14 = tpu.matmul %1, %13, %cst_14 {dimension_numbers = #tpu.dot_dimension_numbers<[1], [0], [0], [1], [0, 0, 1, 1], [], []>} : vector<64x64xbf16>, vector<64x128xbf16>, vector<64x128xf32> -> vector<64x128xf32>
    %15 = vector.broadcast %4 : vector<64x1xf32> to vector<64x128xf32>
    %16 = arith.addf %14, %15 : vector<64x128xf32>
    %cst_15 = arith.constant 0.000000e+00 : f32
    %17 = vector.broadcast %cst_15 : f32 to vector<64x128xf32>
    %18 = arith.maximumf %16, %17 : vector<64x128xf32>
    %19 = arith.truncf %18 : vector<64x128xf32> to vector<64x128xbf16>
    %cst_16 = arith.constant dense<0.000000e+00> : vector<2x128xf32>
    %20 = tpu.matmul %2, %19, %cst_16 {dimension_numbers = #tpu.dot_dimension_numbers<[1], [0], [0], [1], [0, 0, 1, 1], [], []>} : vector<2x64xbf16>, vector<64x128xbf16>, vector<2x128xf32> -> vector<2x128xf32>
    %21 = vector.broadcast %5 : vector<2x1xf32> to vector<2x128xf32>
    %22 = arith.addf %20, %21 : vector<2x128xf32>
    %c0_17 = arith.constant 0 : index
    %c0_18 = arith.constant 0 : index
    %23 = vector.load %arg8[%c0_17, %c0_18] : memref<2x128xf32, #tpu.memory_space<vmem>>, vector<2x128xf32>
    tpu.vector_store %arg8[%c0_17, %c0_18], %22 {strides = array<i32>} : memref<2x128xf32, #tpu.memory_space<vmem>>, vector<2x128xf32>,
    return
  }
  func.func @transform_0(%arg0: i32) -> (i32, i32) {
    %c0_i32 = arith.constant 0 : i32
    %c0_i32_0 = arith.constant 0 : i32
    return %c0_i32, %arg0 : i32, i32
  }
  func.func @transform_1(%arg0: i32) -> (i32, i32) {
    %c0_i32 = arith.constant 0 : i32
    %c0_i32_0 = arith.constant 0 : i32
    %c0_i32_1 = arith.constant 0 : i32
    return %c0_i32, %c0_i32_0 : i32, i32
  }
  func.func @transform_2(%arg0: i32) -> (i32, i32) {
    %c0_i32 = arith.constant 0 : i32
    %c0_i32_0 = arith.constant 0 : i32
    %c0_i32_1 = arith.constant 0 : i32
    return %c0_i32, %c0_i32_0 : i32, i32
  }
  func.func @transform_3(%arg0: i32) -> (i32, i32) {
    %c0_i32 = arith.constant 0 : i32
    %c0_i32_0 = arith.constant 0 : i32
    %c0_i32_1 = arith.constant 0 : i32
    return %c0_i32, %c0_i32_0 : i32, i32
  }
  func.func @transform_4(%arg0: i32) -> (i32, i32) {
    %c0_i32 = arith.constant 0 : i32
    %c0_i32_0 = arith.constant 0 : i32
    %c0_i32_1 = arith.constant 0 : i32
    return %c0_i32, %c0_i32_0 : i32, i32
  }
  func.func @transform_5(%arg0: i32) -> (i32, i32) {
    %c0_i32 = arith.constant 0 : i32
    %c0_i32_0 = arith.constant 0 : i32
    %c0_i32_1 = arith.constant 0 : i32
    return %c0_i32, %c0_i32_0 : i32, i32
  }
  func.func @transform_6(%arg0: i32) -> (i32, i32) {
    %c0_i32 = arith.constant 0 : i32
    %c0_i32_0 = arith.constant 0 : i32
    %c0_i32_1 = arith.constant 0 : i32
    return %c0_i32, %c0_i32_0 : i32, i32
  }
  func.func @transform_7(%arg0: i32) -> (i32, i32) {
    %c0_i32 = arith.constant 0 : i32
    %c0_i32_0 = arith.constant 0 : i32
    return %c0_i32, %arg0 : i32, i32
  }
}

</mosaic_0001>

<bundles_post_ra>
// kernel: mapnet_forward.1
= control target key start
LH: loop header
LB: loop body
LE: loop exit
PB: predicated region body
PF: predicated region fallthrough
CT: control target
= control target key end

     0   :  { %s746_s24 = smov 0   ;;  %s854_s0 = inlined_call_operand.vmem [shape: f32[4,256], index: 0, kind: input, shape index: {}]   ;;  %s855_s1 = inlined_call_operand.vmem [shape: bf16[64,4], index: 1, kind: input, shape index: {}]   ;;  %s856_s2 = inlined_call_operand.vmem [shape: f32[64,1], index: 2, kind: input, shape index: {}]   ;;  %s857_s3 = inlined_call_operand.vmem [shape: bf16[64,64], index: 3, kind: input, shape index: {}]   ;;  %s858_s4 = inlined_call_operand.vmem [shape: f32[64,1], index: 4, kind: input, shape index: {}]   ;;  %s859_s5 = inlined_call_operand.vmem [shape: bf16[2,64], index: 5, kind: input, shape index: {}]   ;;  %s860_s6 = inlined_call_operand.vmem [shape: f32[2,1], index: 6, kind: input, shape index: {}]   ;;  %s861_s7 = inlined_call_operand.vmem [shape: f32[2,256], index: 7, kind: output, shape index: {}]  }
   0x1 LB: > { %s618_s25 = sadd.s32 4294967295, %s703_s24   ;;  %p622_p0 = scmp.ge.s32.totalorder %s703_s24, 1  ;;  %s703_s24 = sphi %s746_s24, %s17_s24  }
   0x2   : > { %p236_p1 = scmp.lt.s32.totalorder %s703_s24, 3 }
   0x4   : > { %p237_p2 = pnand %p622_p0, %p236_p1 }
   0x5   : > { %p266_p3 = scmp.lt.s32.totalorder (!%p237_p2), %s618_s25, 1 }
   0x6   : > { %240 = sbr.rel (%p237_p2) target bundleno = 523 (0x20b), region = 48 }
   0xb   : > { %v298_v0 = vld [vmem:[%s856_s2 + $0x30] sm:$0xff]  ;;  %v705_v1 = vmov 0   ;;  %v296_v2 = vld [vmem:[%s856_s2 + $0x20] sm:$0xff]  ;;  %s863_s25 = smov (!%p266_p3, %s618_s25), 1  ;;  %vm384_vm0 = vcmask 1041408   ;;  %v299_v5 = vld [vmem:[%s856_s2 + $0x38] sm:$0xff] }
   0xc   : > { %694 = vset.pattern.permute.xlu0 %v705_v1  ;;  %695 = vset.pattern.permute.xlu1 %v705_v1  ;;  %s623_s30 = sshll.u32 %s863_s25, 2  ;;  %v297_v6 = vld [vmem:[%s856_s2 + $0x28] sm:$0xff]  ;;  %v668_v8 = vld [vmem:[%s855_s1] sm:$0xff]  ;;  %vm371_vm1 = vcmask 31744   ;;  %v671_v9 = vld [vmem:[%s855_s1 + $0x18] sm:$0xff]  ;;  %vm489_vm2 = vcmask 523264  }
   0xd   : > { %343 = vperm.xlu0 %694, %v298_v0   ;;  %333 = vperm.xlu1 %695, %v296_v2   ;;  %s269_s10 = scalar_lea.vmem %s854_s0, %s623_s30  ;;  %v294_v10 = vld [vmem:[%s856_s2 + $0x10] sm:$0xff]  ;;  %v292_v11 = vld [vmem:[%s856_s2] sm:$0xff]  ;;  %v293_v12 = vld [vmem:[%s856_s2 + $0x8] sm:$0xff]  ;;  %s624_s17 = sshll.u32 %s863_s25, 1 }
   0xe   : > { %696 = vset.pattern.permute.xlu2 %v705_v1  ;;  %v309_v3 = vld [vmem:[%s269_s10] sm:$0xf]  ;;  %v295_v13 = vld [vmem:[%s856_s2 + $0x18] sm:$0xff]  ;;  %v669_v16 = vld [vmem:[%s855_s1 + $0x8] sm:$0xff]  ;;  %s273_s20 = scalar_lea.vmem %s861_s7, %s624_s17 }
   0xf   : > { %v310_v4 = vpack.c.bf16 %v309_v3, %v309_v3  ;;  %323 = vperm.xlu2 %696, %v294_v10   ;;  %v307_v14 = vld [vmem:[%s858_s4 + $0x38] sm:$0xff]  ;;  %v304_v15 = vld [vmem:[%s858_s4 + $0x20] sm:$0xff]  ;;  %v306_v17 = vld [vmem:[%s858_s4 + $0x30] sm:$0xff] }
  0x10   : > { %v302_v18 = vld [vmem:[%s858_s4 + $0x10] sm:$0xff]  ;;  %v303_v19 = vld [vmem:[%s858_s4 + $0x18] sm:$0xff]  ;;  %v305_v20 = vld [vmem:[%s858_s4 + $0x28] sm:$0xff] }
  0x11   : > { %v386_v7 = vsel %vm384_vm0, %v310_v4, 0  ;;  %v301_v21 = vld [vmem:[%s858_s4 + $0x8] sm:$0xff]  ;;  %v308_v22 = vld [vmem:[%s860_s6] sm:$0x3]  ;;  %v670_v23 = vld [vmem:[%s855_s1 + $0x10] sm:$0xff] }
  0x12   : > { %395 = vmatpush.bf16.msra.mxu0 %v386_v7  ;;  %676 = vmatpush.bf16.msra.mxu1 %v386_v7  ;;  %v300_v24 = vld [vmem:[%s858_s4] sm:$0xff]  ;;  %v673_v62 = vld [vmem:[%s857_s3 + $0x8] sm:$0xff]  ;;  %v674_v63 = vld [vmem:[%s857_s3 + $0x10] sm:$0xff] }
  0x13   : > { %v672_v61 = vld [vmem:[%s857_s3] sm:$0xff]  ;;  %v675_v0 = vld [vmem:[%s857_s3 + $0x18] sm:$0xff] }
  0x15   : > { %348 = vperm.xlu0 %694, %v299_v5   ;;  %338 = vperm.xlu1 %695, %v297_v6  }
  0x16   : > { %641 = vmatmul.msk.bf16.vlgmr.msra.gmra.mxu0 %vm371_vm1, %v668_v8  ;;  %644 = vmatmul.msk.bf16.vlgmr.msra.gmra.mxu1 %vm371_vm1, %v671_v9 }
  0x17   : > { %328 = vperm.xlu2 %696, %v295_v13  }
  0x1d   : > { %313 = vperm.xlu0 %694, %v292_v11   ;;  %318 = vperm.xlu1 %695, %v293_v12  }
  0x1f   : > { %461 = vperm.xlu2 %696, %v306_v17  }
  0x25   : > { %466 = vperm.xlu0 %694, %v307_v14   ;;  %451 = vperm.xlu1 %695, %v304_v15  }
  0x26   : > { %642 = vmatmul.msk.bf16.gmra.mxu0 %vm371_vm1, %v669_v16 }
  0x27   : > { %456 = vperm.xlu2 %696, %v305_v20  }
  0x2d   : > { %441 = vperm.xlu0 %694, %v302_v18   ;;  %446 = vperm.xlu1 %695, %v303_v19  }
  0x2f   : > { %431 = vperm.xlu2 %696, %v300_v24  }
  0x35   : > { %436 = vperm.xlu0 %694, %v301_v21   ;;  %545 = vperm.xlu1 %695, %v308_v22  }
  0x36   : > { %643 = vmatmul.msk.bf16.gmra.mxu0 %vm371_vm1, %v670_v23 }
  0x69   : > { %v324_v39 = vpop.permute.xlu2 %323 }
  0x71   : > { %v329_v43 = vpop.permute.xlu2 %328 }
  0x79   : > { %v462_v4 = vpop.permute.xlu2 %461 }
  0x7f   : > { %v344_v25 = vpop.permute.xlu0 %343  ;;  %v334_v37 = vpop.permute.xlu1 %333 }
  0x81   : > { %v457_v11 = vpop.permute.xlu2 %456 }
  0x87   : > { %v349_v30 = vpop.permute.xlu0 %348  ;;  %v339_v40 = vpop.permute.xlu1 %338 }
  0x8f   : > { %v319_v47 = vpop.permute.xlu1 %318  ;;  %v314_v51 = vpop.permute.xlu0 %313 }
  0x93   : > { %v397_v26 = vpop.f32.mrf.mxu0  ;;  %v412_v27 = vpop.f32.mrf.mxu1 }
  0x94   : > { %v413_v28 = vadd.f32 %v412_v27, %v344_v25  ;;  %v398_v55 = vadd.f32 %v397_v26, %v314_v51 }
  0x96   : > { %v423_v32 = vmax.f32 %v413_v28, 0.0  ;;  %v417_v59 = vmax.f32 %v398_v55, 0.0 }
  0x97   : > { %v467_v3 = vpop.permute.xlu0 %466  ;;  %v452_v7 = vpop.permute.xlu1 %451 }
  0x9b   : > { %v399_v29 = vpop.f32.mrf.mxu0  ;;  %v414_v31 = vpop.f32.mrf.mxu1 }
  0x9c   : > { %v415_v33 = vadd.f32 %v414_v31, %v349_v30  ;;  %v400_v52 = vadd.f32 %v399_v29, %v319_v47  ;;  %v432_v30 = vpop.permute.xlu2 %431 }
  0x9e   : > { %v424_v34 = vmax.f32 %v415_v33, 0.0  ;;  %v418_v57 = vmax.f32 %v400_v52, 0.0 }
  0x9f   : > { %v442_v9 = vpop.permute.xlu0 %441  ;;  %v447_v19 = vpop.permute.xlu1 %446 }
  0xa0   : > { %v428_v35 = vpack.c.bf16 %v424_v34, %v423_v32  ;;  %v425_v60 = vpack.c.bf16 %v418_v57, %v417_v59 }
  0xa2   : > { %506 = vmatpush.bf16.msrb.mxu1 %v428_v35  ;;  %677 = vmatpush.bf16.msra.mxu2 %v428_v35 }
  0xa3   : > { %v402_v36 = vpop.f32.mrf.mxu0  ;;  %678 = vmatpush.bf16.msra.mxu3 %v428_v35 }
  0xa4   : > { %v403_v48 = vadd.f32 %v402_v36, %v324_v39 }
  0xa6   : > { %v419_v56 = vmax.f32 %v403_v48, 0.0 }
  0xa7   : > { %v437_v26 = vpop.permute.xlu0 %436 }
  0xab   : > { %v404_v38 = vpop.f32.mrf.mxu0 }
  0xac   : > { %v405_v45 = vadd.f32 %v404_v38, %v329_v43  ;;  %v546_v38 = vpop.permute.xlu1 %545 }
  0xae   : > { %v420_v53 = vmax.f32 %v405_v45, 0.0 }
  0xb0   : > { %v426_v58 = vpack.c.bf16 %v420_v53, %v419_v56 }
  0xb3   : > { %v407_v41 = vpop.f32.mrf.mxu0 }
  0xb4   : > { %v408_v42 = vadd.f32 %v407_v41, %v334_v37  ;;  %v291_v37 = vld [vmem:[%s859_s5] sm:$0x1] }
  0xb6   : > { %v421_v49 = vmax.f32 %v408_v42, 0.0 }
  0xbb   : > { %v409_v44 = vpop.f32.mrf.mxu0 }
  0xbc   : > { %v410_v46 = vadd.f32 %v409_v44, %v339_v40 }
  0xbe   : > { %v422_v50 = vmax.f32 %v410_v46, 0.0 }
  0xc0   : > { %v427_v54 = vpack.c.bf16 %v422_v50, %v421_v49 }
  0xc2   : > { %507 = vmatpush.bf16.msrb.mxu1 %v427_v54  ;;  %679 = vmatpush.bf16.msra.mxu2 %v427_v54 }
  0xc3   : > { %680 = vmatpush.bf16.msra.mxu3 %v427_v54 }
  0xc6   : > { %508 = vmatpush.bf16.msrb.mxu1 %v426_v58  ;;  %681 = vmatpush.bf16.msra.mxu2 %v426_v58 }
  0xc7   : > { %682 = vmatpush.bf16.msra.mxu3 %v426_v58 }
  0xca   : > { %509 = vmatpush.bf16.msrb.mxu1 %v425_v60  ;;  %683 = vmatpush.bf16.msra.mxu2 %v425_v60 }
  0xcb   : > { %684 = vmatpush.bf16.msra.mxu3 %v425_v60 }
  0xcd   : > { %661 = vmatmul.msk.bf16.vlgmr.msrb.gmra.mxu1 %vm489_vm2, %v672_v61  ;;  %662 = vmatmul.msk.bf16.vlgmr.msra.gmra.mxu2 %vm489_vm2, %v673_v62 }
  0xce   : > { %663 = vmatmul.msk.bf16.vlgmr.msra.gmra.mxu3 %vm489_vm2, %v674_v63 }
  0xde   : > { %664 = vmatmul.msk.bf16.gmra.mxu3 %vm489_vm2, %v675_v0 }
 0x14a   : > { %v511_v8 = vpop.f32.mrf.mxu1 }
 0x14b   : > { %v512_v31 = vadd.f32 %v511_v8, %v432_v30 }
 0x14d   : > { %v531_v35 = vmax.f32 %v512_v31, 0.0 }
 0x150   : > { %v516_v5 = vpop.f32.mrf.mxu2 }
 0x151   : > { %v521_v1 = vpop.f32.mrf.mxu3  ;;  %v517_v24 = vadd.f32 %v516_v5, %v442_v9 }
 0x152   : > { %v522_v16 = vadd.f32 %v521_v1, %v452_v7  ;;  %v513_v23 = vpop.f32.mrf.mxu1 }
 0x153   : > { %v514_v27 = vadd.f32 %v513_v23, %v437_v26  ;;  %v533_v32 = vmax.f32 %v517_v24, 0.0 }
 0x154   : > { %v535_v25 = vmax.f32 %v522_v16, 0.0 }
 0x155   : > { %v532_v33 = vmax.f32 %v514_v27, 0.0 }
 0x157   : > { %v539_v36 = vpack.c.bf16 %v532_v33, %v531_v35 }
 0x158   : > { %v518_v15 = vpop.f32.mrf.mxu2 }
 0x159   : > { %v523_v2 = vpop.f32.mrf.mxu3  ;;  %v519_v20 = vadd.f32 %v518_v15, %v447_v19 }
 0x15a   : > { %v524_v13 = vadd.f32 %v523_v2, %v457_v11 }
 0x15b   : > { %v534_v28 = vmax.f32 %v519_v20, 0.0 }
 0x15c   : > { %v536_v21 = vmax.f32 %v524_v13, 0.0 }
 0x15d   : > { %v540_v34 = vpack.c.bf16 %v534_v28, %v533_v32 }
 0x15e   : > { %v541_v29 = vpack.c.bf16 %v536_v21, %v535_v25 }
 0x161   : > { %v526_v6 = vpop.f32.mrf.mxu3 }
 0x162   : > { %v527_v10 = vadd.f32 %v526_v6, %v462_v4 }
 0x164   : > { %v537_v17 = vmax.f32 %v527_v10, 0.0 }
 0x169   : > { %v528_v12 = vpop.f32.mrf.mxu3 }
 0x16a   : > { %v529_v14 = vadd.f32 %v528_v12, %v467_v3 }
 0x16c   : > { %v538_v18 = vmax.f32 %v529_v14, 0.0 }
 0x16e   : > { %v542_v22 = vpack.c.bf16 %v538_v18, %v537_v17 }
 0x170   : > { %555 = vmatpush.bf16.msrb.mxu2 %v542_v22 }
 0x174   : > { %556 = vmatpush.bf16.msrb.mxu2 %v541_v29 }
 0x178   : > { %557 = vmatpush.bf16.msrb.mxu2 %v540_v34 }
 0x17c   : > { %558 = vmatpush.bf16.msrb.mxu2 %v539_v36 }
 0x17f   : > { %665 = vmatmul.msk.bf16.vlgmr.msrb.gmra.mxu2 %vm489_vm2, %v291_v37 }
 0x202   : > { %v560_v39 = vpop.f32.mrf.mxu2 }
 0x203   : > { %v561_v40 = vadd.f32 %v560_v39, %v546_v38 }
 0x205   : > { %564 = vst [vmem:[%s273_s20] sm:$0x3] %v561_v40 }
 0x20a   : > { %v562_v41 = vpop.f32.mrf.mxu2 }
 0x20b PF: > { %s17_s24 = sadd.s32 1, %s703_s24  }
 0x20c   : > { %p14_p4 = scmp.ge.s32.totalorder %s17_s24, 4  }
 0x20e   :  { %16 = sbr.rel (!%p14_p4) target bundleno = 1 (0x1), region = 78 }

</bundles_post_ra>
